<compile_context>
chip_gen: v6e
topology: v6e:2x2x1
jax: 0.10.0
libtpu: 0.0.40
codegen_flags: <defaults>
</compile_context>

<pallas_src>
import jax
import jax.numpy as jnp
from jax import lax
from jax.experimental import pallas as pl
from jax.experimental.pallas import tpu as pltpu


# ---------------------------------------------------------------------------
# Hardware-aware limits
# ---------------------------------------------------------------------------
def _vmem_limit_bytes():
    cap = 64 * 1024 * 1024
    try:
        cap = int(pltpu.get_tpu_info().vmem_capacity_bytes)
    except Exception:
        pass
    # ~78% of physical: ~100 MiB on v5e/v6e (128 MiB), ~50 MiB on v7x (64 MiB).
    return max(32 * 1024 * 1024, min(int(cap * 0.78), 100 * 1024 * 1024))


def _num_tensorcores():
    try:
        info = pltpu.get_tpu_info()
        for attr in ("num_cores", "core_count", "tensorcore_count"):
            v = getattr(info, attr, None)
            if v:
                return max(1, int(v))
    except Exception:
        pass
    try:
        return max(1, int(getattr(jax.devices()[0], "num_cores", 1)))
    except Exception:
        return 1


def _round_up(v, m):
    return ((v + m - 1) // m) * m


def _pad_to(a, shape):
    return jnp.pad(a, [(0, s - d) for d, s in zip(a.shape, shape)])


def _pick_tile(dim, prefs):
    for p in prefs:
        if dim % p == 0:
            return p
    return dim


# ---------------------------------------------------------------------------
# Generic tiled matmul + bias:  out[M, N] = A[M, K] @ B[K, N] + bias[1, N]
# ---------------------------------------------------------------------------
def _matmul_bias_acc_kernel(a_ref, b_ref, bias_ref, o_ref, acc_ref):
    @pl.when(pl.program_id(2) == 0)
    def _():
        acc_ref[...] = jnp.zeros_like(acc_ref)

    acc_ref[...] += jnp.dot(a_ref[...], b_ref[...],
                            preferred_element_type=jnp.float32)

    @pl.when(pl.program_id(2) == pl.num_programs(2) - 1)
    def _():
        o_ref[...] = (acc_ref[...] + bias_ref[...]).astype(o_ref.dtype)


def _matmul_bias_single_k_kernel(a_ref, b_ref, bias_ref, o_ref):
    # K fits in one block: no accumulator scratch, bias added directly.
    o_ref[...] = (jnp.dot(a_ref[...], b_ref[...],
                          preferred_element_type=jnp.float32)
                  + bias_ref[...]).astype(o_ref.dtype)


def _matmul_bias(a, b, bias, out_dtype, vmem_limit):
    M, K = a.shape
    _, N = b.shape
    budget = int(vmem_limit * 0.85)
    ab = a.dtype.itemsize
    bb = b.dtype.itemsize
    ob = jnp.dtype(out_dtype).itemsize

    tn = _pick_tile(N, (512, 256, 128))
    tk = _pick_tile(K, (1024, 512, 256, 128))
    single_k = (K == tk)

    tm = 8
    for cand in (1024, 512, 256, 128, 64, 32, 16, 8):
        if M % cand:
            continue
        fp = (2 * (cand * tk * ab + tk * tn * bb)   # double-buffered A, B tiles
              + 2 * cand * tn * ob                  # double-buffered out tile
              + 2 * 8 * tn * 4)                     # bias tile
        if not single_k:
            fp += cand * tn * 4                     # f32 accumulator scratch
        if fp <= budget:
            tm = cand
            break

    if single_k:
        return pl.pallas_call(
            _matmul_bias_single_k_kernel,
            out_shape=jax.ShapeDtypeStruct((M, N), out_dtype),
            grid_spec=pltpu.PrefetchScalarGridSpec(
                num_scalar_prefetch=0,
                grid=(M // tm, N // tn),
                in_specs=[
                    pl.BlockSpec((tm, tk), lambda i, j: (i, 0)),
                    pl.BlockSpec((tk, tn), lambda i, j: (0, j)),
                    pl.BlockSpec((1, tn), lambda i, j: (0, j)),
                ],
                out_specs=pl.BlockSpec((tm, tn), lambda i, j: (i, j)),
            ),
            compiler_params=pltpu.CompilerParams(
                dimension_semantics=("parallel", "parallel"),
                vmem_limit_bytes=vmem_limit),
        )(a, b, bias)

    return pl.pallas_call(
        _matmul_bias_acc_kernel,
        out_shape=jax.ShapeDtypeStruct((M, N), out_dtype),
        grid_spec=pltpu.PrefetchScalarGridSpec(
            num_scalar_prefetch=0,
            grid=(M // tm, N // tn, K // tk),
            in_specs=[
                pl.BlockSpec((tm, tk), lambda i, j, k: (i, k)),
                pl.BlockSpec((tk, tn), lambda i, j, k: (k, j)),
                pl.BlockSpec((1, tn), lambda i, j, k: (0, j)),
            ],
            out_specs=pl.BlockSpec((tm, tn), lambda i, j, k: (i, j)),
            scratch_shapes=[pltpu.VMEM((tm, tn), jnp.float32)],
        ),
        compiler_params=pltpu.CompilerParams(
            dimension_semantics=("parallel", "parallel", "arbitrary"),
            vmem_limit_bytes=vmem_limit),
    )(a, b, bias)


# ---------------------------------------------------------------------------
# LSTM recurrence: consumes precomputed gates_x[T, B, 4H] (bf16, = x@W_ih^T + bias),
# keeps h/c in f32 VMEM scratch, TS timesteps per grid step, batch sub-tiled inside
# the step for MXU/EUP overlap, final dense projection optionally fused.
# ---------------------------------------------------------------------------
def _recurrence_footprint(TS, TB, H_p, V_p, fuse_dense):
    fp = 2 * TS * TB * 4 * H_p * 2        # double-buffered bf16 gates_x tile
    fp += H_p * 4 * H_p * 2               # W_hh resident (single copy, bf16)
    fp += 2 * TB * H_p * 4                # h, c f32 scratch
    if fuse_dense:
        fp += H_p * V_p * 2               # dense weight resident (bf16)
        fp += 8 * V_p * 4                 # dense bias
        fp += 2 * TB * V_p * 4            # logits output (double-buffered, f32)
    else:
        fp += 2 * TB * H_p * 2            # h_last output (bf16)
    return fp


def _choose_recurrence_tiles(B_p, T, H_p, V_p, fuse_dense, budget, n_tc):
    tb_divs = [d for d in range(B_p, 0, -8) if d % 8 == 0 and B_p % d == 0]
    if not tb_divs:
        tb_divs = [B_p]
    # On 1 TC, batch tiling only multiplies the sequential time loop: prefer TB=B_p.
    # On >=2 TCs, prefer exactly two batch tiles iff each is still MXU-sized.
    if n_tc >= 2 and B_p % 2 == 0 and (B_p // 2) >= 128 and (B_p // 2) in tb_divs:
        tb_divs = [B_p // 2] + [d for d in tb_divs if d != B_p // 2]
    ts_divs = [d for d in (32, 16, 8, 4, 2, 1) if T % d == 0]
    for TB in tb_divs:
        for TS in ts_divs:
            if _recurrence_footprint(TS, TB, H_p, V_p, fuse_dense) <= budget:
                return TS, TB
    return 1, tb_divs[-1]


def _make_recurrent_kernel(H_p, TS, sub_rows, n_chunks, fuse_dense):
    unroll = True if TS <= 8 else 8       # cap unroll when time block is large

    def _gate_math(gates, c_prev):
        i_g = jax.nn.sigmoid(gates[:, 0 * H_p:1 * H_p])
        f_g = jax.nn.sigmoid(gates[:, 1 * H_p:2 * H_p])
        g_g = jnp.tanh(gates[:, 2 * H_p:3 * H_p])
        o_g = jax.nn.sigmoid(gates[:, 3 * H_p:4 * H_p])
        c_new = f_g * c_prev + i_g * g_g
        h_new = o_g * jnp.tanh(c_new)
        return h_new, c_new

    def _body(gx_ref, whh_ref, emit, h_sc, c_sc):
        s = pl.program_id(1)

        @pl.when(s == 0)  # fresh zero state for each batch tile
        def _():
            h_sc[...] = jnp.zeros_like(h_sc)
            c_sc[...] = jnp.zeros_like(c_sc)

        def step(t, carry):
            hs, cs = carry
            new_h, new_c = [], []
            # Independent batch sub-tiles: the scheduler overlaps the MXU matmul of
            # one chunk with the EUP/VPU gate math of another, and the f32 gate slab
            # per chunk stays within the vreg budget.
            for ci in range(n_chunks):
                lo = ci * sub_rows
                # W_hh is read from VMEM inside the step (short live range, no
                # long-lived 32+ vreg value across the unrolled loop).
                gates = (gx_ref[t, lo:lo + sub_rows, :].astype(jnp.float32)
                         + jnp.dot(hs[ci].astype(jnp.bfloat16), whh_ref[...],
                                   preferred_element_type=jnp.float32))
                h_n, c_n = _gate_math(gates, cs[ci])
                new_h.append(h_n)
                new_c.append(c_n)
            return tuple(new_h), tuple(new_c)

        init = (
            tuple(h_sc[ci * sub_rows:(ci + 1) * sub_rows, :] for ci in range(n_chunks)),
            tuple(c_sc[ci * sub_rows:(ci + 1) * sub_rows, :] for ci in range(n_chunks)),
        )
        hs, cs = lax.fori_loop(0, TS, step, init, unroll=unroll)
        for ci in range(n_chunks):
            h_sc[ci * sub_rows:(ci + 1) * sub_rows, :] = hs[ci]
            c_sc[ci * sub_rows:(ci + 1) * sub_rows, :] = cs[ci]

        # Only emit on the last time block (saves a VMEM store per block).
        @pl.when(s == pl.num_programs(1) - 1)
        def _():
            emit(h_sc)

    if fuse_dense:
        def kernel(gx_ref, whh_ref, wd_ref, bd_ref, logits_ref, h_sc, c_sc):
            def emit(h_state):
                h_last = h_state[...].astype(jnp.bfloat16)
                logits_ref[...] = (
                    jnp.dot(h_last, wd_ref[...],
                            preferred_element_type=jnp.float32)
                    + bd_ref[...]).astype(logits_ref.dtype)
            _body(gx_ref, whh_ref, emit, h_sc, c_sc)
    else:
        def kernel(gx_ref, whh_ref, hout_ref, h_sc, c_sc):
            def emit(h_state):
                hout_ref[...] = h_state[...].astype(hout_ref.dtype)
            _body(gx_ref, whh_ref, emit, h_sc, c_sc)

    return kernel


# ---------------------------------------------------------------------------
# Forward pass
# ---------------------------------------------------------------------------
def my_lstm_forward(x, params):
    """x: [B, T, num_tokens] (batch_first, like the PyTorch module)."""
    w_ih, w_hh, b_ih, b_hh, w_d, b_d = (
        params["w_ih"], params["w_hh"], params["b_ih"], params["b_hh"],
        params["w_dense"], params["b_dense"])

    B, T, D = x.shape
    H = w_hh.shape[1]                      # lstm_dim
    V = w_d.shape[0]                       # num_tokens (output)
    assert w_ih.shape[0] == 4 * H

    vmem_limit = _vmem_limit_bytes()
    budget = int(vmem_limit * 0.85)
    n_tc = _num_tensorcores()

    # Padded, hardware-friendly dims.
    B_p = _round_up(B, 8)                  # sublane
    H_p = _round_up(H, 128)                # lane-aligned gate slabs
    D_p = _round_up(D, 128)
    V_p = _round_up(V, 128)

    # --- Weight packing (bf16, per-gate padded so i/f/g/o slices are lane-aligned) ---
    wih_t = jnp.transpose(_pad_to(w_ih.reshape(4, H, D), (4, H_p, D_p)),
                          (2, 0, 1)).reshape(D_p, 4 * H_p).astype(jnp.bfloat16)
    whh_t = jnp.transpose(_pad_to(w_hh.reshape(4, H, H), (4, H_p, H_p)),
                          (2, 0, 1)).reshape(H_p, 4 * H_p).astype(jnp.bfloat16)
    bias_g = _pad_to((b_ih + b_hh).reshape(4, H), (4, H_p)) \
        .reshape(1, 4 * H_p).astype(jnp.float32)
    wd_t = _pad_to(jnp.transpose(w_d), (H_p, V_p)).astype(jnp.bfloat16)
    bd = _pad_to(b_d, (V_p,)).reshape(1, V_p).astype(jnp.float32)

    # --- Input: cast to bf16 first (half the bytes to move), then pad + transpose
    #     to time-major in one expression so XLA can fuse pad into the copy. ---
    x_tm = jnp.transpose(_pad_to(x.astype(jnp.bfloat16), (B_p, T, D_p)), (1, 0, 2))

    # 1) Input projection for ALL timesteps in one big MXU matmul (+ combined bias).
    #    Output stored bf16: halves HBM traffic and VMEM footprint of the recurrence.
    gates_x = _matmul_bias(x_tm.reshape(T * B_p, D_p), wih_t, bias_g,
                           jnp.bfloat16, vmem_limit).reshape(T, B_p, 4 * H_p)

    # 2) Recurrence tiles from the VMEM budget (not just divisibility).
    fuse_dense = (H_p * V_p * 2) <= budget // 4
    TS, TB = _choose_recurrence_tiles(B_p, T, H_p, V_p, fuse_dense, budget, n_tc)
    sub_rows = _pick_tile(TB, (64, 32, 16, 8))   # <=64 rows per gate-math chunk
    n_chunks = TB // sub_rows

    kernel = _make_recurrent_kernel(H_p, TS, sub_rows, n_chunks, fuse_dense)

    in_specs = [
        pl.BlockSpec((TS, TB, 4 * H_p), lambda b, s: (s, b, 0)),
        # Grid-invariant W_hh: whole array in VMEM once (single-buffered).
        pl.BlockSpec(memory_space=pltpu.MemorySpace.VMEM),
    ]
    inputs = [gates_x, whh_t]
    if fuse_dense:
        in_specs += [pl.BlockSpec(memory_space=pltpu.MemorySpace.VMEM),
                     pl.BlockSpec(memory_space=pltpu.MemorySpace.VMEM)]
        inputs += [wd_t, bd]
        out_shape = jax.ShapeDtypeStruct((B_p, V_p), jnp.float32)
        out_spec = pl.BlockSpec((TB, V_p), lambda b, s: (b, 0))
    else:
        out_shape = jax.ShapeDtypeStruct((B_p, H_p), jnp.bfloat16)
        out_spec = pl.BlockSpec((TB, H_p), lambda b, s: (b, 0))

    result = pl.pallas_call(
        kernel,
        out_shape=out_shape,
        grid_spec=pltpu.PrefetchScalarGridSpec(
            num_scalar_prefetch=0,
            grid=(B_p // TB, T // TS),
            in_specs=in_specs,
            out_specs=out_spec,
            scratch_shapes=[
                pltpu.VMEM((TB, H_p), jnp.float32),   # h state
                pltpu.VMEM((TB, H_p), jnp.float32),   # c state
            ],
        ),
        compiler_params=pltpu.CompilerParams(
            dimension_semantics=("parallel", "arbitrary"),
            vmem_limit_bytes=vmem_limit),
    )(*inputs)

    # Dropout: identity at inference.
    # TODO(synk): training-mode dropout (random mask + 1/(1-p) scale) not applied.

    if fuse_dense:
        logits_p = result                                  # [B_p, V_p] f32
    else:
        logits_p = _matmul_bias(result, wd_t, bd, jnp.float32, vmem_limit)
    return logits_p[:B, :V]


def init_params(key, num_tokens, lstm_dim):
    """Deterministic init matching the PyTorch parameter shapes."""
    ks = jax.random.split(key, 6)
    k = 1.0 / jnp.sqrt(lstm_dim)
    u = lambda kk, shape: jax.random.uniform(kk, shape, jnp.float32, -k, k)
    return {
        "w_ih": u(ks[0], (4 * lstm_dim, num_tokens)),
        "w_hh": u(ks[1], (4 * lstm_dim, lstm_dim)),
        "b_ih": u(ks[2], (4 * lstm_dim,)),
        "b_hh": u(ks[3], (4 * lstm_dim,)),
        "w_dense": u(ks[4], (num_tokens, lstm_dim)),
        "b_dense": u(ks[5], (num_tokens,)),
    }


if __name__ == "__main__":
    B, T, num_tokens, lstm_dim = 2, 8, 16, 32

    key = jax.random.PRNGKey(0)
    kx, kp = jax.random.split(key)
    x = jax.random.normal(kx, (B, T, num_tokens), jnp.float32)
    params = init_params(kp, num_tokens, lstm_dim)

    out = my_lstm_forward(x, params)
    out = jax.block_until_ready(out)
    assert out.shape == (B, num_tokens), out.shape
    print("KERNEL_OK")
</pallas_src>

<mosaic_0001>
module attributes {stable_mosaic.version = 11 : i64} {
  func.func @_matmul_bias_single_k_kernel(%arg0: i32, %arg1: i32, %arg2: memref<64x128xbf16, #tpu.memory_space<vmem>>, %arg3: memref<128x512xbf16, #tpu.memory_space<vmem>>, %arg4: memref<1x512xf32, #tpu.memory_space<vmem>>, %arg5: memref<64x512xbf16, #tpu.memory_space<vmem>>) attributes {dimension_semantics = [#tpu.dimension_semantics<parallel>, #tpu.dimension_semantics<parallel>], iteration_bounds = array<i64: 1, 1>, scalar_prefetch = 0 : i64, scratch_operands = 0 : i64, tpu.core_type = #tpu.core_type<tc>, window_params = [{transform_indices = @transform_0, window_bounds = array<i64: 64, 128>}, {transform_indices = @transform_1, window_bounds = array<i64: 128, 512>}, {transform_indices = @transform_2, window_bounds = array<i64: 1, 512>}, {transform_indices = @transform_3, window_bounds = array<i64: 64, 512>}]} {
    %c0 = arith.constant 0 : index
    %c0_0 = arith.constant 0 : index
    %0 = vector.load %arg2[%c0, %c0_0] : memref<64x128xbf16, #tpu.memory_space<vmem>>, vector<64x128xbf16>
    %c0_1 = arith.constant 0 : index
    %c0_2 = arith.constant 0 : index
    %1 = vector.load %arg3[%c0_1, %c0_2] : memref<128x512xbf16, #tpu.memory_space<vmem>>, vector<128x512xbf16>
    %cst = arith.constant dense<0.000000e+00> : vector<64x512xf32>
    %2 = tpu.matmul %0, %1, %cst {dimension_numbers = #tpu.dot_dimension_numbers<[1], [0], [0], [1], [0, 0, 1, 1], [], []>} : vector<64x128xbf16>, vector<128x512xbf16>, vector<64x512xf32> -> vector<64x512xf32>
    %c0_3 = arith.constant 0 : index
    %c0_4 = arith.constant 0 : index
    %3 = vector.load %arg4[%c0_3, %c0_4] : memref<1x512xf32, #tpu.memory_space<vmem>>, vector<1x512xf32>
    %4 = vector.broadcast %3 : vector<1x512xf32> to vector<64x512xf32>
    %5 = arith.addf %2, %4 : vector<64x512xf32>
    %6 = arith.truncf %5 : vector<64x512xf32> to vector<64x512xbf16>
    %c0_5 = arith.constant 0 : index
    %c0_6 = arith.constant 0 : index
    %7 = vector.load %arg5[%c0_5, %c0_6] : memref<64x512xbf16, #tpu.memory_space<vmem>>, vector<64x512xbf16>
    tpu.vector_store %arg5[%c0_5, %c0_6], %6 {strides = array<i32>} : memref<64x512xbf16, #tpu.memory_space<vmem>>, vector<64x512xbf16>,
    return
  }
  func.func @transform_0(%arg0: i32, %arg1: i32) -> (i32, i32) {
    %c0_i32 = arith.constant 0 : i32
    %c0_i32_0 = arith.constant 0 : i32
    return %arg0, %c0_i32 : i32, i32
  }
  func.func @transform_1(%arg0: i32, %arg1: i32) -> (i32, i32) {
    %c0_i32 = arith.constant 0 : i32
    %c0_i32_0 = arith.constant 0 : i32
    return %c0_i32, %arg1 : i32, i32
  }
  func.func @transform_2(%arg0: i32, %arg1: i32) -> (i32, i32) {
    %c0_i32 = arith.constant 0 : i32
    %c0_i32_0 = arith.constant 0 : i32
    return %c0_i32, %arg1 : i32, i32
  }
  func.func @transform_3(%arg0: i32, %arg1: i32) -> (i32, i32) {
    %c0_i32 = arith.constant 0 : i32
    return %arg0, %arg1 : i32, i32
  }
}

</mosaic_0001>

<bundles_post_ra>
// kernel: tpu_custom_call.1
= control target key start
LH: loop header
LB: loop body
LE: loop exit
PB: predicated region body
PF: predicated region fallthrough
CT: control target
= control target key end

     0   :  { %8 = vsyncpa [#allocation3], 0  ;;  %s887_s0 = inlined_call_operand.hbm [shape: bf16[64,128], index: 0, kind: input, shape index: {}]   ;;  %s888_s1 = inlined_call_operand.hbm [shape: bf16[128,512], index: 1, kind: input, shape index: {}]   ;;  %s889_s2 = inlined_call_operand.hbm [shape: f32[1,512], index: 2, kind: input, shape index: {}]   ;;  %s890_s3 = inlined_call_operand.hbm [shape: bf16[64,512], index: 3, kind: output, shape index: {}]  }
   0x1   :  { %9 = vsyncpa [#allocation6], 0 }
   0x2   :  { %10 = vsyncpa [#allocation4], 0  ;;  %s792_s12 = smov [#allocation5]  }
   0x3   :  { %s28_s13 = sshll.u32 %s792_s12, 4  ;;  %s29_s13 = int_to_ptr.vmem [resolvable:$true] %s28_s13 }
   0x4   :  { %s714_s14 = scalar_lea.vmem %s29_s13, 4096  ;;  %p719_p1 = scmp.lt.s32.totalorder %s29_s13, %s29_s13 }
   0x5   :  { %p715_p0 = scmp.ne.s32.totalorder %s29_s13, %s714_s14  ;;  %p720_p2 = scmp.lt.s32.totalorder %s714_s14, %s714_s14 }
   0x7   :  { %p721_p3 = por %p720_p2, %p719_p1 }
   0x9   :  { %p722_p4 = pnand %p721_p3, %p715_p0 }
   0xb   :  { %725 = shalt.err (!%p722_p4)
}
   0xc   :  { %s793_s15 = smov 256   ;;  %s794_s16 = smov 16  }
   0xd   :  { %34 = dma.hbm_to_vmem [thread:$0]  %s888_s1, 4096, %s29_s13, [#allocation6], %s793_s15, %s793_s15, %s794_s16  }
   0xe   :  { %s795_s19 = smov [#allocation2]  }
   0xf   :  { %s16_s20 = sshll.u32 %s795_s19, 4  ;;  %s17_s20 = int_to_ptr.vmem [resolvable:$true] %s16_s20 }
  0x10   :  { %s734_s21 = scalar_lea.vmem %s17_s20, 512  ;;  %p739_p6 = scmp.lt.s32.totalorder %s17_s20, %s17_s20 }
  0x11   :  { %p735_p5 = scmp.ne.s32.totalorder %s17_s20, %s734_s21  ;;  %p740_p7 = scmp.lt.s32.totalorder %s734_s21, %s734_s21 }
  0x13   :  { %p741_p8 = por %p740_p7, %p739_p6 }
  0x15   :  { %p742_p9 = pnand %p741_p8, %p735_p5 }
  0x17   :  { %745 = shalt.err (!%p742_p9)
}
  0x18   :  { %s796_s22 = smov 64   ;;  %s797_s23 = smov 4  }
  0x19   :  { %22 = dma.hbm_to_vmem [thread:$0]  %s887_s0, 512, %s17_s20, [#allocation3], %s796_s22, %s796_s22, %s797_s23  }
  0x1a   :  { %s798_s26 = smov [#allocation7]  }
  0x1b   :  { %s41_s27 = sshll.u32 %s798_s26, 4  ;;  %s42_s27 = int_to_ptr.vmem [resolvable:$true] %s41_s27 }
  0x1c   :  { %s754_s1 = scalar_lea.vmem %s42_s27, 64  ;;  %p759_p11 = scmp.lt.s32.totalorder %s42_s27, %s42_s27 }
  0x1d   :  { %p755_p10 = scmp.ne.s32.totalorder %s42_s27, %s754_s1  ;;  %p760_p12 = scmp.lt.s32.totalorder %s754_s1, %s754_s1 }
  0x1f   :  { %p761_p13 = por %p760_p12, %p759_p11 }
  0x21   :  { %p762_p0 = pnand %p761_p13, %p755_p10 }
  0x23   :  { %765 = shalt.err (!%p762_p0)
}
  0x24   :  { %44 = dma.hbm_to_vmem [thread:$0]  %s889_s2, 64, %s42_s27, [#allocation6]  }
  0x25   :  { %786 = dma.done.wait [#allocation3], 512  }
  0x26   :  { %787 = vsyncadd [#allocation3], 4294966784 }
  0x27   :  { %788 = dma.done.wait [#allocation6], 4160  }
  0x28   :  { %789 = vsyncadd [#allocation6], 4294963136  ;;  %v799_v0 = vmov 0   ;;  %v654_v1 = vld [vmem:[#allocation5 + $0xe4] ss:$16 sps:$4 sm:$0xff]   ;;  %v703_v34 = vld [vmem:[#allocation2 + $0x8] sm:$0xff]   ;;  %v97_v37 = vlaneseq }
  0x29   :  { %333 = vmatprep.mubr.bf16.mxu0 %v799_v0  ;;  %406 = vmatprep.mubr.bf16.mxu1 %v799_v0  ;;  %v656_v2 = vld [vmem:[#allocation5 + $0xec] ss:$16 sps:$4 sm:$0xff]   ;;  %v658_v3 = vld [vmem:[#allocation5 + $0xe0] ss:$16 sps:$4 sm:$0xff]   ;;  %v659_v4 = vld [vmem:[#allocation5 + $0xe8] ss:$16 sps:$4 sm:$0xff]  }
  0x2a   :  { %301 = vmatprep.subr.bf16.mxu0 %v654_v1  ;;  %374 = vmatprep.subr.bf16.mxu1 %v656_v2  ;;  %v660_v5 = vld [vmem:[#allocation5 + $0xc4] ss:$16 sps:$4 sm:$0xff]   ;;  %v662_v6 = vld [vmem:[#allocation5 + $0xcc] ss:$16 sps:$4 sm:$0xff]   ;;  %v664_v7 = vld [vmem:[#allocation5 + $0xc0] ss:$16 sps:$4 sm:$0xff]  }
  0x2b   :  { %302 = vmatpush1.bf16.msra.mxu0 %v658_v3  ;;  %375 = vmatpush1.bf16.msra.mxu1 %v659_v4  ;;  %v665_v8 = vld [vmem:[#allocation5 + $0xc8] ss:$16 sps:$4 sm:$0xff]   ;;  %v666_v9 = vld [vmem:[#allocation5 + $0xa4] ss:$16 sps:$4 sm:$0xff]   ;;  %v668_v10 = vld [vmem:[#allocation5 + $0xac] ss:$16 sps:$4 sm:$0xff]  }
  0x2c   :  { %303 = vmatprep.subr.bf16.mxu0 %v660_v5  ;;  %376 = vmatprep.subr.bf16.mxu1 %v662_v6  ;;  %v670_v11 = vld [vmem:[#allocation5 + $0xa0] ss:$16 sps:$4 sm:$0xff]   ;;  %v671_v12 = vld [vmem:[#allocation5 + $0xa8] ss:$16 sps:$4 sm:$0xff]   ;;  %v672_v13 = vld [vmem:[#allocation5 + $0x84] ss:$16 sps:$4 sm:$0xff]  }
  0x2d   :  { %v674_v14 = vld [vmem:[#allocation5 + $0x8c] ss:$16 sps:$4 sm:$0xff]   ;;  %v676_v15 = vld [vmem:[#allocation5 + $0x80] ss:$16 sps:$4 sm:$0xff]   ;;  %v677_v16 = vld [vmem:[#allocation5 + $0x88] ss:$16 sps:$4 sm:$0xff]  }
  0x2e   :  { %v678_v17 = vld [vmem:[#allocation5 + $0x64] ss:$16 sps:$4 sm:$0xff]   ;;  %v680_v18 = vld [vmem:[#allocation5 + $0x6c] ss:$16 sps:$4 sm:$0xff]   ;;  %v682_v19 = vld [vmem:[#allocation5 + $0x60] ss:$16 sps:$4 sm:$0xff]  }
  0x2f   :  { %304 = vmatpush1.bf16.msra.mxu0 %v664_v7  ;;  %377 = vmatpush1.bf16.msra.mxu1 %v665_v8  ;;  %v683_v20 = vld [vmem:[#allocation5 + $0x68] ss:$16 sps:$4 sm:$0xff]   ;;  %v684_v21 = vld [vmem:[#allocation5 + $0x44] ss:$16 sps:$4 sm:$0xff]   ;;  %v686_v22 = vld [vmem:[#allocation5 + $0x4c] ss:$16 sps:$4 sm:$0xff]  }
  0x30   :  { %305 = vmatprep.subr.bf16.mxu0 %v666_v9  ;;  %378 = vmatprep.subr.bf16.mxu1 %v668_v10  ;;  %v688_v23 = vld [vmem:[#allocation5 + $0x40] ss:$16 sps:$4 sm:$0xff]   ;;  %v689_v24 = vld [vmem:[#allocation5 + $0x48] ss:$16 sps:$4 sm:$0xff]   ;;  %v690_v25 = vld [vmem:[#allocation5 + $0x24] ss:$16 sps:$4 sm:$0xff]  }
  0x31   :  { %v692_v26 = vld [vmem:[#allocation5 + $0x2c] ss:$16 sps:$4 sm:$0xff]   ;;  %v694_v27 = vld [vmem:[#allocation5 + $0x20] ss:$16 sps:$4 sm:$0xff]   ;;  %v695_v28 = vld [vmem:[#allocation5 + $0x28] ss:$16 sps:$4 sm:$0xff]  }
  0x32   :  { %v696_v29 = vld [vmem:[#allocation5 + $0x4] ss:$16 sps:$4 sm:$0xff]   ;;  %v698_v30 = vld [vmem:[#allocation5 + $0xc] ss:$16 sps:$4 sm:$0xff]   ;;  %v700_v31 = vld [vmem:[#allocation5] ss:$16 sps:$4 sm:$0xff]  }
  0x33   :  { %306 = vmatpush1.bf16.msra.mxu0 %v670_v11  ;;  %379 = vmatpush1.bf16.msra.mxu1 %v671_v12  ;;  %v701_v32 = vld [vmem:[#allocation5 + $0x8] ss:$16 sps:$4 sm:$0xff]   ;;  %v702_v33 = vld [vmem:[#allocation2] sm:$0xff]   ;;  %v704_v35 = vld [vmem:[#allocation2 + $0x10] sm:$0xff]   ;;  %v98_v38 = vshrl.u32 %v97_v37, 7  ;;  %s800_s0 = smov [#allocation8]  }
  0x34   :  { %307 = vmatprep.subr.bf16.mxu0 %v672_v13  ;;  %380 = vmatprep.subr.bf16.mxu1 %v674_v14  ;;  %v705_v36 = vld [vmem:[#allocation2 + $0x18] sm:$0xff]   ;;  %v95_v43 = vld [vmem:[#allocation7] sm:$0xf]  ;;  %s564_s2 = sshll.u32 %s800_s0, 4  ;;  %s565_s2 = int_to_ptr.vmem [resolvable:$true] %s564_s2 }
  0x35   :  { %v99_v39 = vsub.s32 0, %v98_v38  ;;  %v107_v40 = vsub.s32 2, %v98_v38  ;;  %v103_v41 = vsub.s32 1, %v98_v38  ;;  %v111_v42 = vsub.s32 3, %v98_v38  ;;  %s766_s30 = scalar_lea.vmem %s565_s2, 2048  ;;  %p771_p2 = scmp.lt.s32.totalorder %s565_s2, %s565_s2 }
  0x36   :  { %p767_p1 = scmp.ne.s32.totalorder %s565_s2, %s766_s30  ;;  %p772_p3 = scmp.lt.s32.totalorder %s766_s30, %s766_s30 }
  0x37   :  { %308 = vmatpush1.bf16.msra.mxu0 %v676_v15  ;;  %381 = vmatpush1.bf16.msra.mxu1 %v677_v16  ;;  %v841_v44 = vrot.slane %v95_v43, %v99_v39  ;;  %v843_v45 = vrot.slane %v95_v43, %v107_v40  ;;  %v845_v46 = vrot.slane %v95_v43, %v103_v41 }
  0x38   :  { %309 = vmatprep.subr.bf16.mxu0 %v678_v17  ;;  %382 = vmatprep.subr.bf16.mxu1 %v680_v18  ;;  %v847_v47 = vrot.slane %v95_v43, %v111_v42  ;;  %p773_p4 = por %p772_p3, %p771_p2 }
  0x3a   :  { %p774_p5 = pnand %p773_p4, %p767_p1 }
  0x3b   :  { %310 = vmatpush1.bf16.msra.mxu0 %v682_v19  ;;  %383 = vmatpush1.bf16.msra.mxu1 %v683_v20 }
  0x3c   :  { %311 = vmatprep.subr.bf16.mxu0 %v684_v21  ;;  %384 = vmatprep.subr.bf16.mxu1 %v686_v22 }
  0x3f   :  { %312 = vmatpush1.bf16.msra.mxu0 %v688_v23  ;;  %385 = vmatpush1.bf16.msra.mxu1 %v689_v24 }
  0x40   :  { %313 = vmatprep.subr.bf16.mxu0 %v690_v25  ;;  %386 = vmatprep.subr.bf16.mxu1 %v692_v26 }
  0x43   :  { %314 = vmatpush1.bf16.msra.mxu0 %v694_v27  ;;  %387 = vmatpush1.bf16.msra.mxu1 %v695_v28 }
  0x44   :  { %315 = vmatprep.subr.bf16.mxu0 %v696_v29  ;;  %388 = vmatprep.subr.bf16.mxu1 %v698_v30 }
  0x47   :  { %316 = vmatpush1.bf16.msra.mxu0 %v700_v31  ;;  %389 = vmatpush1.bf16.msra.mxu1 %v701_v32 }
  0x4a   :  { %334 = vmatmul.mubr.bf16.vlgmr.msra.gmra.mxu0 %v702_v33  ;;  %407 = vmatmul.mubr.bf16.vlgmr.msra.gmra.mxu1 %v702_v33 }
  0x4b   :  { %343 = vmatprep.mubr.bf16.mxu0 %v799_v0  ;;  %416 = vmatprep.mubr.bf16.mxu1 %v799_v0 }
  0x52   :  { %344 = vmatmul.mubr.bf16.gmra.mxu0 %v703_v34  ;;  %417 = vmatmul.mubr.bf16.gmra.mxu1 %v703_v34 }
  0x53   :  { %353 = vmatprep.mubr.bf16.mxu0 %v799_v0  ;;  %426 = vmatprep.mubr.bf16.mxu1 %v799_v0 }
  0x5a   :  { %354 = vmatmul.mubr.bf16.gmra.mxu0 %v704_v35  ;;  %427 = vmatmul.mubr.bf16.gmra.mxu1 %v704_v35 }
  0x5b   :  { %363 = vmatprep.mubr.bf16.mxu0 %v799_v0  ;;  %436 = vmatprep.mubr.bf16.mxu1 %v799_v0 }
  0x62   :  { %364 = vmatmul.mubr.bf16.gmra.mxu0 %v705_v36  ;;  %437 = vmatmul.mubr.bf16.gmra.mxu1 %v705_v36 }
 0x10a   :  { %v335_v48 = vpop.f32.mrf.mxu0  ;;  %v408_v49 = vpop.f32.mrf.mxu1 }
 0x10b   :  { %v336_v52 = vadd.f32 %v335_v48, %v841_v44  ;;  %v409_v53 = vadd.f32 %v408_v49, %v843_v45 }
 0x10c   :  { %v337_v50 = vpop.f32.mrf.mxu0  ;;  %v410_v51 = vpop.f32.mrf.mxu1 }
 0x10d   :  { %v338_v54 = vadd.f32 %v337_v50, %v845_v46  ;;  %v411_v55 = vadd.f32 %v410_v51, %v847_v47 }
 0x10e   :  { %v339_v56 = vpop.f32.mrf.mxu0  ;;  %v412_v57 = vpop.f32.mrf.mxu1 }
 0x10f   :  { %v629_v58 = vpack.c.bf16 %v338_v54, %v336_v52  ;;  %v630_v59 = vpack.c.bf16 %v411_v55, %v409_v53  ;;  %v340_v62 = vadd.f32 %v339_v56, %v841_v44  ;;  %v413_v63 = vadd.f32 %v412_v57, %v843_v45 }
 0x110   :  { %v341_v60 = vpop.f32.mrf.mxu0  ;;  %v414_v61 = vpop.f32.mrf.mxu1 }
 0x111   :  { %543 = vst [vmem:[#allocation8] sm:$0xff] %v629_v58  ;;  %544 = vst [vmem:[#allocation8 + $0x8] sm:$0xff] %v630_v59  ;;  %v342_v0 = vadd.f32 %v341_v60, %v845_v46  ;;  %v415_v1 = vadd.f32 %v414_v61, %v847_v47 }
 0x112   :  { %v345_v2 = vpop.f32.mrf.mxu0  ;;  %v418_v3 = vpop.f32.mrf.mxu1 }
 0x113   :  { %v631_v4 = vpack.c.bf16 %v342_v0, %v340_v62  ;;  %v632_v5 = vpack.c.bf16 %v415_v1, %v413_v63  ;;  %v346_v8 = vadd.f32 %v345_v2, %v841_v44  ;;  %v419_v9 = vadd.f32 %v418_v3, %v843_v45 }
 0x114   :  { %v347_v6 = vpop.f32.mrf.mxu0  ;;  %v420_v7 = vpop.f32.mrf.mxu1 }
 0x115   :  { %545 = vst [vmem:[#allocation8 + $0x10] sm:$0xff] %v631_v4  ;;  %546 = vst [vmem:[#allocation8 + $0x18] sm:$0xff] %v632_v5  ;;  %v348_v10 = vadd.f32 %v347_v6, %v845_v46  ;;  %v421_v11 = vadd.f32 %v420_v7, %v847_v47 }
 0x116   :  { %v349_v12 = vpop.f32.mrf.mxu0  ;;  %v422_v13 = vpop.f32.mrf.mxu1 }
 0x117   :  { %v633_v14 = vpack.c.bf16 %v348_v10, %v346_v8  ;;  %v634_v15 = vpack.c.bf16 %v421_v11, %v419_v9  ;;  %v350_v18 = vadd.f32 %v349_v12, %v841_v44  ;;  %v423_v19 = vadd.f32 %v422_v13, %v843_v45 }
 0x118   :  { %v351_v16 = vpop.f32.mrf.mxu0  ;;  %v424_v17 = vpop.f32.mrf.mxu1 }
 0x119   :  { %547 = vst [vmem:[#allocation8 + $0x20] sm:$0xff] %v633_v14  ;;  %548 = vst [vmem:[#allocation8 + $0x28] sm:$0xff] %v634_v15  ;;  %v352_v20 = vadd.f32 %v351_v16, %v845_v46  ;;  %v425_v21 = vadd.f32 %v424_v17, %v847_v47 }
 0x11a   :  { %v355_v22 = vpop.f32.mrf.mxu0  ;;  %v428_v23 = vpop.f32.mrf.mxu1 }
 0x11b   :  { %v635_v24 = vpack.c.bf16 %v352_v20, %v350_v18  ;;  %v636_v25 = vpack.c.bf16 %v425_v21, %v423_v19  ;;  %v356_v28 = vadd.f32 %v355_v22, %v841_v44  ;;  %v429_v29 = vadd.f32 %v428_v23, %v843_v45 }
 0x11c   :  { %v357_v26 = vpop.f32.mrf.mxu0  ;;  %v430_v27 = vpop.f32.mrf.mxu1 }
 0x11d   :  { %549 = vst [vmem:[#allocation8 + $0x30] sm:$0xff] %v635_v24  ;;  %550 = vst [vmem:[#allocation8 + $0x38] sm:$0xff] %v636_v25  ;;  %v358_v30 = vadd.f32 %v357_v26, %v845_v46  ;;  %v431_v31 = vadd.f32 %v430_v27, %v847_v47 }
 0x11e   :  { %v359_v32 = vpop.f32.mrf.mxu0  ;;  %v432_v33 = vpop.f32.mrf.mxu1 }
 0x11f   :  { %v637_v34 = vpack.c.bf16 %v358_v30, %v356_v28  ;;  %v638_v35 = vpack.c.bf16 %v431_v31, %v429_v29  ;;  %v360_v38 = vadd.f32 %v359_v32, %v841_v44  ;;  %v433_v39 = vadd.f32 %v432_v33, %v843_v45 }
 0x120   :  { %v361_v36 = vpop.f32.mrf.mxu0  ;;  %v434_v37 = vpop.f32.mrf.mxu1 }
 0x121   :  { %551 = vst [vmem:[#allocation8 + $0x40] sm:$0xff] %v637_v34  ;;  %552 = vst [vmem:[#allocation8 + $0x48] sm:$0xff] %v638_v35  ;;  %v362_v40 = vadd.f32 %v361_v36, %v845_v46  ;;  %v435_v41 = vadd.f32 %v434_v37, %v847_v47 }
 0x122   :  { %v365_v42 = vpop.f32.mrf.mxu0  ;;  %v438_v43 = vpop.f32.mrf.mxu1 }
 0x123   :  { %v639_v48 = vpack.c.bf16 %v362_v40, %v360_v38  ;;  %v640_v49 = vpack.c.bf16 %v435_v41, %v433_v39  ;;  %v366_v52 = vadd.f32 %v365_v42, %v841_v44  ;;  %v439_v53 = vadd.f32 %v438_v43, %v843_v45 }
 0x124   :  { %v367_v50 = vpop.f32.mrf.mxu0  ;;  %v440_v51 = vpop.f32.mrf.mxu1 }
 0x125   :  { %553 = vst [vmem:[#allocation8 + $0x50] sm:$0xff] %v639_v48  ;;  %554 = vst [vmem:[#allocation8 + $0x58] sm:$0xff] %v640_v49  ;;  %v368_v54 = vadd.f32 %v367_v50, %v845_v46  ;;  %v441_v55 = vadd.f32 %v440_v51, %v847_v47 }
 0x126   :  { %v369_v56 = vpop.f32.mrf.mxu0  ;;  %v442_v57 = vpop.f32.mrf.mxu1 }
 0x127   :  { %v641_v58 = vpack.c.bf16 %v368_v54, %v366_v52  ;;  %v642_v59 = vpack.c.bf16 %v441_v55, %v439_v53  ;;  %v370_v62 = vadd.f32 %v369_v56, %v841_v44  ;;  %v443_v63 = vadd.f32 %v442_v57, %v843_v45 }
 0x128   :  { %v371_v60 = vpop.f32.mrf.mxu0  ;;  %v444_v61 = vpop.f32.mrf.mxu1 }
 0x129   :  { %555 = vst [vmem:[#allocation8 + $0x60] sm:$0xff] %v641_v58  ;;  %556 = vst [vmem:[#allocation8 + $0x68] sm:$0xff] %v642_v59  ;;  %v372_v0 = vadd.f32 %v371_v60, %v845_v46  ;;  %v445_v1 = vadd.f32 %v444_v61, %v847_v47 }
 0x12b   :  { %v643_v2 = vpack.c.bf16 %v372_v0, %v370_v62  ;;  %v644_v3 = vpack.c.bf16 %v445_v1, %v443_v63 }
 0x12d   :  { %557 = vst [vmem:[#allocation8 + $0x70] sm:$0xff] %v643_v2  ;;  %558 = vst [vmem:[#allocation8 + $0x78] sm:$0xff] %v644_v3 }
 0x12e   :  { %777 = shalt.err (!%p774_p5)
}
 0x12f   :  { %570 = dma.vmem_to_hbm [thread:$0]  %s565_s2, 2048, %s890_s3, [#allocation4], %s793_s15, %s793_s15, %s794_s16  }
 0x130   :  { %790 = dma.done.wait [#allocation4], 2048  }
 0x131   :  { %791 = vsyncadd [#allocation4], 4294965248 }
 0x132   :  { %574 = vsyncpa [#allocation3], 1 }
 0x133   :  { %575 = vsyncpa [#allocation6], 1 }
 0x134   :  { %576 = vsyncpa [#allocation4], 1 }

</bundles_post_ra>
